<compile_context>
chip_gen: v7x
topology: tpu7x:2x2x1
jax: 0.10.0
libtpu: 0.0.40
codegen_flags: <defaults>
</compile_context>

<pallas_src>
import functools

import jax
import jax.numpy as jnp
from jax import lax
from jax.experimental import pallas as pl
from jax.experimental.pallas import tpu as pltpu

EPS = 1e-5
EXPANSION = 4
LANE = 128
VMEM_LIMIT = 48 * 1024 * 1024  # fits v7x's 64 MiB physical VMEM with headroom


# ---------------------------------------------------------------------------
# small helpers
# ---------------------------------------------------------------------------
def _round_up(x, m):
    return ((x + m - 1) // m) * m


def _pad_last(a, n):
    p = n - a.shape[-1]
    if p == 0:
        return a
    return jnp.pad(a, [(0, 0)] * (a.ndim - 1) + [(0, p)])


def _pad_last2(a, n1, n2):
    p1 = n1 - a.shape[-2]
    p2 = n2 - a.shape[-1]
    if p1 == 0 and p2 == 0:
        return a
    return jnp.pad(a, [(0, 0)] * (a.ndim - 2) + [(0, p1), (0, p2)])


def fold_bn(bn):
    gamma, beta, mean, var = bn
    scale = gamma / jnp.sqrt(var + EPS)
    shift = beta - mean * scale
    return (scale.reshape(1, -1).astype(jnp.float32),
            shift.reshape(1, -1).astype(jnp.float32))


# ---------------------------------------------------------------------------
# Pallas kernels
# ---------------------------------------------------------------------------
def _stage1_kernel(x_ref, s1_ref, b1_ref, w1_ref, s2_ref, b2_ref, a2_ref):
    # a2 = relu(bn2( relu(bn1(x)) @ W1 ))  for one (TM, C) row tile.
    pre = jnp.maximum(x_ref[...].astype(jnp.float32) * s1_ref[...] + b1_ref[...], 0.0)
    h = jnp.dot(pre.astype(jnp.bfloat16), w1_ref[...],
                preferred_element_type=jnp.float32)
    a2_ref[...] = jnp.maximum(h * s2_ref[...] + b2_ref[...], 0.0).astype(a2_ref.dtype)


def _stage2_kernel(*refs, stride, out_hw, has_shortcut):
    # One image per grid step:
    #   conv2 (3x3, stride, pad=1) as 9 tap-accumulated matmuls from the resident
    #   padded slab, then relu(bn3(.)) @ W3 + shortcut, one lane-dense f32 store.
    if has_shortcut:
        (a2p_ref, w2_ref, s3_ref, b3_ref, w3_ref,
         x_ref, s1_ref, b1_ref, wsc_ref, o_ref) = refs
    else:
        a2p_ref, w2_ref, s3_ref, b3_ref, w3_ref, x_ref, o_ref = refs

    ho, wo = out_hw
    p = w2_ref.shape[-1]

    # conv2: 9 taps accumulated in f32 (static unroll -> 9 MXU matmuls).
    acc = jnp.zeros((ho * wo, p), jnp.float32)
    for k in range(9):
        dy, dx = divmod(k, 3)
        if stride == 1:
            sl_h, sl_w = pl.ds(dy, ho), pl.ds(dx, wo)
        else:
            sl_h = pl.ds(dy, ho, stride=stride)
            sl_w = pl.ds(dx, wo, stride=stride)
        win = a2p_ref[0, sl_h, sl_w, :]                       # (ho, wo, p) bf16
        acc = acc + jnp.dot(win.reshape(ho * wo, p), w2_ref[k],
                            preferred_element_type=jnp.float32)

    # bn3 + relu fused into the conv3 prologue.
    a3 = jnp.maximum(acc * s3_ref[...] + b3_ref[...], 0.0)
    out = jnp.dot(a3.astype(jnp.bfloat16), w3_ref[...],
                  preferred_element_type=jnp.float32)

    if has_shortcut:
        # shortcut = (relu(bn1(x)) strided) @ Wsc ; bn1+relu is recomputed here (cheap
        # VPU filler under the MXU) so pre1 never has to round-trip HBM.
        if stride == 1:
            xb = x_ref[0]
        else:
            xb = x_ref[0, pl.ds(0, ho, stride=stride), pl.ds(0, wo, stride=stride), :]
        pre = jnp.maximum(xb.astype(jnp.float32) * s1_ref[...] + b1_ref[...], 0.0)
        sc = jnp.dot(pre.reshape(ho * wo, pre.shape[-1]).astype(jnp.bfloat16),
                     wsc_ref[...], preferred_element_type=jnp.float32)
    else:
        # identity shortcut (implies stride == 1 and in_planes == expansion*planes)
        sc = x_ref[0].reshape(ho * wo, out.shape[-1]).astype(jnp.float32)

    o_ref[0] = (out + sc).reshape(ho, wo, out.shape[-1])


# ---------------------------------------------------------------------------
# Parameter construction (deterministic, synthetic)
# ---------------------------------------------------------------------------
def init_params(key, in_planes, planes, stride):
    out_planes = EXPANSION * planes
    keys = jax.random.split(key, 8)

    def bn_params(k, c):
        k1, k2, k3, k4 = jax.random.split(k, 4)
        gamma = 1.0 + 0.1 * jax.random.normal(k1, (c,), jnp.float32)
        beta = 0.1 * jax.random.normal(k2, (c,), jnp.float32)
        mean = 0.1 * jax.random.normal(k3, (c,), jnp.float32)
        var = jnp.abs(jax.random.normal(k4, (c,), jnp.float32)) + 0.5
        return (gamma, beta, mean, var)

    params = {
        "bn1": bn_params(keys[0], in_planes),
        "conv1": 0.1 * jax.random.normal(keys[1], (in_planes, planes), jnp.float32),     # 1x1 [Cin,Cout]
        "bn2": bn_params(keys[2], planes),
        "conv2": 0.1 * jax.random.normal(keys[3], (3, 3, planes, planes), jnp.float32),  # HWIO
        "bn3": bn_params(keys[4], planes),
        "conv3": 0.1 * jax.random.normal(keys[5], (planes, out_planes), jnp.float32),    # 1x1 [Cin,Cout]
    }
    if stride != 1 or in_planes != out_planes:
        params["shortcut"] = 0.1 * jax.random.normal(
            keys[6], (in_planes, out_planes), jnp.float32)                               # 1x1 [Cin,Cout]
    return params


# ---------------------------------------------------------------------------
# PreActBottleneck forward (Pallas)
# ---------------------------------------------------------------------------
def preact_bottleneck_forward(x_nchw, params, stride):
    N, Cin, H, W = x_nchw.shape
    planes = params["conv1"].shape[1]
    out_planes = params["conv3"].shape[1]
    has_sc = "shortcut" in params
    Ho = (H - 1) // stride + 1
    Wo = (W - 1) // stride + 1

    cin_p = _round_up(Cin, LANE)
    p_p = _round_up(planes, LANE)
    o_p = _round_up(out_planes, LANE)

    # NCHW -> NHWC, bf16 MXU operands, lane-dense (zero-padded) channel axes.
    x = _pad_last(jnp.transpose(x_nchw, (0, 2, 3, 1)).astype(jnp.bfloat16), cin_p)

    s1, b1 = fold_bn(params["bn1"])
    s1, b1 = _pad_last(s1, cin_p), _pad_last(b1, cin_p)
    s2, b2 = fold_bn(params["bn2"])
    s2, b2 = _pad_last(s2, p_p), _pad_last(b2, p_p)
    s3, b3 = fold_bn(params["bn3"])
    s3, b3 = _pad_last(s3, p_p), _pad_last(b3, p_p)

    w1 = _pad_last2(params["conv1"].astype(jnp.bfloat16), cin_p, p_p)
    w2 = _pad_last2(params["conv2"].reshape(9, planes, planes).astype(jnp.bfloat16), p_p, p_p)
    w3 = _pad_last2(params["conv3"].astype(jnp.bfloat16), p_p, o_p)

    # ---- stage 1: a2 = relu(bn2(relu(bn1(x)) @ W1)), tiled & pipelined over M rows ----
    M = N * H * W
    tm = 256 if M <= 2048 else 512
    m_pad = _round_up(M, tm)
    x_flat = x.reshape(M, cin_p)
    if m_pad != M:
        x_flat = jnp.pad(x_flat, ((0, m_pad - M), (0, 0)))

    stage1_cost = pl.CostEstimate(
        flops=2 * m_pad * cin_p * p_p,
        transcendentals=0,
        bytes_accessed=2 * (m_pad * cin_p + m_pad * p_p + cin_p * p_p))

    a2_flat = pl.pallas_call(
        _stage1_kernel,
        out_shape=jax.ShapeDtypeStruct((m_pad, p_p), jnp.bfloat16),
        grid=(m_pad // tm,),
        in_specs=[
            pl.BlockSpec((tm, cin_p), lambda i: (i, 0)),
            pl.BlockSpec((1, cin_p), lambda i: (0, 0)),
            pl.BlockSpec((1, cin_p), lambda i: (0, 0)),
            pl.BlockSpec((cin_p, p_p), lambda i: (0, 0)),
            pl.BlockSpec((1, p_p), lambda i: (0, 0)),
            pl.BlockSpec((1, p_p), lambda i: (0, 0)),
        ],
        out_specs=pl.BlockSpec((tm, p_p), lambda i: (i, 0)),
        compiler_params=pltpu.CompilerParams(
            dimension_semantics=("parallel",), vmem_limit_bytes=VMEM_LIMIT),
        cost_estimate=stage1_cost,
    )(x_flat, s1, b1, w1, s2, b2)

    # ---- stage 2: conv2 (9-tap accum) + bn3/relu + conv3 + shortcut, one image/step ----
    a2 = a2_flat[:M].reshape(N, H, W, p_p)
    a2p = jnp.pad(a2, ((0, 0), (1, 1), (1, 1), (0, 0)))   # spatial halo for the 3x3 conv
    Hp, Wp = H + 2, W + 2

    in_specs = [
        pl.BlockSpec((1, Hp, Wp, p_p), lambda n: (n, 0, 0, 0)),
        pl.BlockSpec((9, p_p, p_p), lambda n: (0, 0, 0)),
        pl.BlockSpec((1, p_p), lambda n: (0, 0)),
        pl.BlockSpec((1, p_p), lambda n: (0, 0)),
        pl.BlockSpec((p_p, o_p), lambda n: (0, 0)),
        pl.BlockSpec((1, H, W, cin_p), lambda n: (n, 0, 0, 0)),
    ]
    args = [a2p, w2, s3, b3, w3, x]
    sc_flops = 0
    wsc_bytes = 0
    if has_sc:
        wsc = _pad_last2(params["shortcut"].astype(jnp.bfloat16), cin_p, o_p)
        in_specs += [
            pl.BlockSpec((1, cin_p), lambda n: (0, 0)),
            pl.BlockSpec((1, cin_p), lambda n: (0, 0)),
            pl.BlockSpec((cin_p, o_p), lambda n: (0, 0)),
        ]
        args += [s1, b1, wsc]
        sc_flops = 2 * cin_p * o_p
        wsc_bytes = 2 * cin_p * o_p

    mo = Ho * Wo
    stage2_cost = pl.CostEstimate(
        flops=N * mo * (18 * p_p * p_p + 2 * p_p * o_p + sc_flops),
        transcendentals=0,
        bytes_accessed=(2 * a2p.size + 2 * x.size + 4 * N * mo * o_p
                        + 2 * w2.size + 2 * w3.size + wsc_bytes))

    kernel2 = functools.partial(_stage2_kernel, stride=stride, out_hw=(Ho, Wo),
                                has_shortcut=has_sc)
    out = pl.pallas_call(
        kernel2,
        out_shape=jax.ShapeDtypeStruct((N, Ho, Wo, o_p), jnp.float32),
        grid=(N,),
        in_specs=in_specs,
        out_specs=pl.BlockSpec((1, Ho, Wo, o_p), lambda n: (n, 0, 0, 0)),
        compiler_params=pltpu.CompilerParams(
            dimension_semantics=("parallel",), vmem_limit_bytes=VMEM_LIMIT),
        cost_estimate=stage2_cost,
    )(*args)

    out = out[..., :out_planes]                     # drop lane padding
    return jnp.transpose(out, (0, 3, 1, 2))         # NHWC -> NCHW


# ---------------------------------------------------------------------------
# Pure-JAX reference (same eval-mode folded BN and bf16-operand / f32-accum numerics)
# ---------------------------------------------------------------------------
def reference_forward(x_nchw, params, stride):
    x = jnp.transpose(x_nchw, (0, 2, 3, 1)).astype(jnp.bfloat16)
    dn = ("NHWC", "HWIO", "NHWC")

    def bn_relu(y, bn):
        s, b = fold_bn(bn)
        return jnp.maximum(y.astype(jnp.float32) * s + b, 0.0)

    def conv(y, w_hwio, s, pad):
        return lax.conv_general_dilated(
            y.astype(jnp.bfloat16), w_hwio.astype(jnp.bfloat16), (s, s), pad,
            dimension_numbers=dn, preferred_element_type=jnp.float32)

    pre1 = bn_relu(x, params["bn1"])
    if "shortcut" in params:
        wsc = params["shortcut"].reshape(1, 1, *params["shortcut"].shape)
        sc = conv(pre1, wsc, stride, "VALID")
    else:
        sc = x.astype(jnp.float32)
    h = conv(pre1, params["conv1"].reshape(1, 1, *params["conv1"].shape), 1, "VALID")
    h = bn_relu(h, params["bn2"])
    h = conv(h, params["conv2"], stride, ((1, 1), (1, 1)))
    h = bn_relu(h, params["bn3"])
    h = conv(h, params["conv3"].reshape(1, 1, *params["conv3"].shape), 1, "VALID")
    return jnp.transpose(h + sc, (0, 3, 1, 2))


if __name__ == "__main__":
    # Small shapes consistent with the module: x is NCHW [2, 4, 16, 16],
    # in_planes=4, planes=4 -> out channels = expansion*planes = 16 (shortcut conv used).
    in_planes, planes, stride = 4, 4, 1
    key = jax.random.PRNGKey(0)
    k_x, k_p = jax.random.split(key)
    x = jax.random.normal(k_x, (2, in_planes, 16, 16), jnp.float32)
    params = init_params(k_p, in_planes, planes, stride)

    out = jax.block_until_ready(preact_bottleneck_forward(x, params, stride))
    ref = jax.block_until_ready(reference_forward(x, params, stride))

    assert out.shape == (2, EXPANSION * planes, 16, 16), out.shape
    max_err = float(jnp.max(jnp.abs(out - ref)))
    # bf16 operands in both paths at identical rounding points -> only f32 reduction-order noise.
    assert max_err < 2e-2, f"mismatch vs reference: {max_err}"

    print("KERNEL_OK")
</pallas_src>

<mosaic_0001>
module attributes {stable_mosaic.version = 11 : i64} {
  func.func @_stage1_kernel(%arg0: i32, %arg1: memref<256x128xbf16, #tpu.memory_space<vmem>>, %arg2: memref<1x128xf32, #tpu.memory_space<vmem>>, %arg3: memref<1x128xf32, #tpu.memory_space<vmem>>, %arg4: memref<128x128xbf16, #tpu.memory_space<vmem>>, %arg5: memref<1x128xf32, #tpu.memory_space<vmem>>, %arg6: memref<1x128xf32, #tpu.memory_space<vmem>>, %arg7: memref<256x128xbf16, #tpu.memory_space<vmem>>) attributes {dimension_semantics = [#tpu.dimension_semantics<parallel>], iteration_bounds = array<i64: 2>, scalar_prefetch = 0 : i64, scratch_operands = 0 : i64, tpu.core_type = #tpu.core_type<tc>, window_params = [{transform_indices = @transform_0, window_bounds = array<i64: 256, 128>}, {pipeline_mode = #tpu.pipeline_mode<synchronous>, transform_indices = @transform_1, window_bounds = array<i64: 1, 128>}, {pipeline_mode = #tpu.pipeline_mode<synchronous>, transform_indices = @transform_2, window_bounds = array<i64: 1, 128>}, {pipeline_mode = #tpu.pipeline_mode<synchronous>, transform_indices = @transform_3, window_bounds = array<i64: 128, 128>}, {pipeline_mode = #tpu.pipeline_mode<synchronous>, transform_indices = @transform_4, window_bounds = array<i64: 1, 128>}, {pipeline_mode = #tpu.pipeline_mode<synchronous>, transform_indices = @transform_5, window_bounds = array<i64: 1, 128>}, {transform_indices = @transform_6, window_bounds = array<i64: 256, 128>}]} {
    %c0 = arith.constant 0 : index
    %c0_0 = arith.constant 0 : index
    %0 = vector.load %arg1[%c0, %c0_0] : memref<256x128xbf16, #tpu.memory_space<vmem>>, vector<256x128xbf16>
    %1 = arith.extf %0 : vector<256x128xbf16> to vector<256x128xf32>
    %c0_1 = arith.constant 0 : index
    %c0_2 = arith.constant 0 : index
    %2 = vector.load %arg2[%c0_1, %c0_2] : memref<1x128xf32, #tpu.memory_space<vmem>>, vector<1x128xf32>
    %3 = vector.broadcast %2 : vector<1x128xf32> to vector<256x128xf32>
    %4 = arith.mulf %1, %3 : vector<256x128xf32>
    %c0_3 = arith.constant 0 : index
    %c0_4 = arith.constant 0 : index
    %5 = vector.load %arg3[%c0_3, %c0_4] : memref<1x128xf32, #tpu.memory_space<vmem>>, vector<1x128xf32>
    %6 = vector.broadcast %5 : vector<1x128xf32> to vector<256x128xf32>
    %7 = arith.addf %4, %6 : vector<256x128xf32>
    %cst = arith.constant 0.000000e+00 : f32
    %8 = vector.broadcast %cst : f32 to vector<256x128xf32>
    %9 = arith.maximumf %7, %8 : vector<256x128xf32>
    %10 = arith.truncf %9 : vector<256x128xf32> to vector<256x128xbf16>
    %c0_5 = arith.constant 0 : index
    %c0_6 = arith.constant 0 : index
    %11 = vector.load %arg4[%c0_5, %c0_6] : memref<128x128xbf16, #tpu.memory_space<vmem>>, vector<128x128xbf16>
    %cst_7 = arith.constant dense<0.000000e+00> : vector<256x128xf32>
    %12 = tpu.matmul %10, %11, %cst_7 {dimension_numbers = #tpu.dot_dimension_numbers<[1], [0], [0], [1], [0, 0, 1, 1], [], []>} : vector<256x128xbf16>, vector<128x128xbf16>, vector<256x128xf32> -> vector<256x128xf32>
    %c0_8 = arith.constant 0 : index
    %c0_9 = arith.constant 0 : index
    %13 = vector.load %arg5[%c0_8, %c0_9] : memref<1x128xf32, #tpu.memory_space<vmem>>, vector<1x128xf32>
    %14 = vector.broadcast %13 : vector<1x128xf32> to vector<256x128xf32>
    %15 = arith.mulf %12, %14 : vector<256x128xf32>
    %c0_10 = arith.constant 0 : index
    %c0_11 = arith.constant 0 : index
    %16 = vector.load %arg6[%c0_10, %c0_11] : memref<1x128xf32, #tpu.memory_space<vmem>>, vector<1x128xf32>
    %17 = vector.broadcast %16 : vector<1x128xf32> to vector<256x128xf32>
    %18 = arith.addf %15, %17 : vector<256x128xf32>
    %cst_12 = arith.constant 0.000000e+00 : f32
    %19 = vector.broadcast %cst_12 : f32 to vector<256x128xf32>
    %20 = arith.maximumf %18, %19 : vector<256x128xf32>
    %21 = arith.truncf %20 : vector<256x128xf32> to vector<256x128xbf16>
    %c0_13 = arith.constant 0 : index
    %c0_14 = arith.constant 0 : index
    %22 = vector.load %arg7[%c0_13, %c0_14] : memref<256x128xbf16, #tpu.memory_space<vmem>>, vector<256x128xbf16>
    tpu.vector_store %arg7[%c0_13, %c0_14], %21 {strides = array<i32>} : memref<256x128xbf16, #tpu.memory_space<vmem>>, vector<256x128xbf16>,
    return
  }
  func.func @transform_0(%arg0: i32) -> (i32, i32) {
    %c0_i32 = arith.constant 0 : i32
    %c0_i32_0 = arith.constant 0 : i32
    return %arg0, %c0_i32 : i32, i32
  }
  func.func @transform_1(%arg0: i32) -> (i32, i32) {
    %c0_i32 = arith.constant 0 : i32
    %c0_i32_0 = arith.constant 0 : i32
    %c0_i32_1 = arith.constant 0 : i32
    return %c0_i32, %c0_i32_0 : i32, i32
  }
  func.func @transform_2(%arg0: i32) -> (i32, i32) {
    %c0_i32 = arith.constant 0 : i32
    %c0_i32_0 = arith.constant 0 : i32
    %c0_i32_1 = arith.constant 0 : i32
    return %c0_i32, %c0_i32_0 : i32, i32
  }
  func.func @transform_3(%arg0: i32) -> (i32, i32) {
    %c0_i32 = arith.constant 0 : i32
    %c0_i32_0 = arith.constant 0 : i32
    %c0_i32_1 = arith.constant 0 : i32
    return %c0_i32, %c0_i32_0 : i32, i32
  }
  func.func @transform_4(%arg0: i32) -> (i32, i32) {
    %c0_i32 = arith.constant 0 : i32
    %c0_i32_0 = arith.constant 0 : i32
    %c0_i32_1 = arith.constant 0 : i32
    return %c0_i32, %c0_i32_0 : i32, i32
  }
  func.func @transform_5(%arg0: i32) -> (i32, i32) {
    %c0_i32 = arith.constant 0 : i32
    %c0_i32_0 = arith.constant 0 : i32
    %c0_i32_1 = arith.constant 0 : i32
    return %c0_i32, %c0_i32_0 : i32, i32
  }
  func.func @transform_6(%arg0: i32) -> (i32, i32) {
    %c0_i32 = arith.constant 0 : i32
    %c0_i32_0 = arith.constant 0 : i32
    return %arg0, %c0_i32 : i32, i32
  }
}

</mosaic_0001>

<bundles_post_ra>
// kernel: tpu_custom_call.1
= control target key start
LH: loop header
LB: loop body
LE: loop exit
PB: predicated region body
PF: predicated region fallthrough
CT: control target
= control target key end

     0   :  { %11 = vsyncpa [#allocation3], 0  ;;  %s2063_s0 = inlined_call_operand.hbm [shape: bf16[512,128], index: 0, kind: input, shape index: {}]   ;;  %s2064_s1 = inlined_call_operand.vmem [shape: f32[1,128], index: 1, kind: input, shape index: {}]   ;;  %s2065_s2 = inlined_call_operand.vmem [shape: f32[1,128], index: 2, kind: input, shape index: {}]   ;;  %s2066_s3 = inlined_call_operand.hbm [shape: bf16[128,128], index: 3, kind: input, shape index: {}]   ;;  %s2067_s4 = inlined_call_operand.vmem [shape: f32[1,128], index: 4, kind: input, shape index: {}]   ;;  %s2068_s5 = inlined_call_operand.vmem [shape: f32[1,128], index: 5, kind: input, shape index: {}]   ;;  %s2069_s6 = inlined_call_operand.hbm [shape: bf16[512,128], index: 6, kind: output, shape index: {}]  }
   0x1   :  { %13 = vsyncpa [#allocation3 + $0x1], 0 }
   0x2   :  { %14 = vsyncpa [#allocation6], 0 }
   0x3   :  { %15 = vsyncpa [#allocation4], 0 }
   0x4   :  { %17 = vsyncpa [#allocation4 + $0x1], 0  ;;  %s1667_s21 = smov 0   ;;  %s1669_s22 = smov 0  }
   0x5   :  { %s1671_s23 = smov 0   ;;  %s1673_s24 = smov 0  }
   0x6 LB: > { %s1688_s25 = sadd.s32 4294967295, %s1623_s24   ;;  %s1070_s26 = sadd.s32 4294967294, %s1623_s24   ;;  %s1623_s24 = sphi %s1673_s24, %s2089_s24   ;;  %s1619_s23 = sphi %s1671_s23, %s2088_s23   ;;  %s1615_s22 = sphi %s1669_s22, %s2087_s22   ;;  %s1611_s21 = sphi %s1667_s21, %s2086_s21  }
   0x7   : > { %p43_p0 = scmp.ne.s32.totalorder %s1615_s22, %s1611_s21  ;;  %p2070_p1 = scmp.eq.s32.totalorder %s1688_s25, 0 }
   0x8   : > { %p178_p3 = scmp.eq.s32.totalorder %s1070_s26, 1  ;;  %p1071_p5 = scmp.ge.s32.totalorder %s1623_s24, 1 }
   0x9   : > { %p1697_p4 = por %p2070_p1, %p43_p0  ;;  %p185_p7 = scmp.lt.s32.totalorder %s1623_s24, 3 }
   0xa   : > { %p1702_p6 = por %p178_p3, %p43_p0  ;;  %s1625_s30 = smov [#allocation5]  }
   0xb   : > { %s2073_s27 = scalar_select %p1697_p4, 1, 0 }
   0xc   : > { %s2074_s28 = scalar_select %p1702_p6, 1, 0 }
   0xd   : > { %p1707_p8 = pnand %p1071_p5, %p185_p7  ;;  %s203_s7 = sshll.u32 %s1625_s30, 4  ;;  %s1711_s7 = int_to_ptr.vmem [resolvable:$true] %s203_s7 }
   0xe   : > { %s1723_s9 = sadd.s32 1, %s1623_s24   ;;  %s30_s10 = sadd.s32 1, %s1619_s23 }
   0xf   : > { %s2075_s29 = scalar_select %p1707_p8, 1, 0 }
  0x10   : > { %p1434_p9 = pneg %p1707_p8  ;;  %s27_s11 = ssub.s32 %s1623_s24, %s1723_s9 }
  0x11   : > { %s1495_s14 = scalar_lea.hbm %s2066_s3, 1024 }
  0x12   : > { %p1718_p11 = pnand %p1434_p9, %p2070_p1  ;;  %p1496_p12 = scmp.ne.s32.totalorder %s2066_s3, %s1495_s14 }
  0x13   : > { %p1502_p5 = scmp.lt.u32.totalorder %s1495_s14, %s2066_s3 }
  0x14   : > { %p1497_p13 = pneg %p1718_p11 }
  0x16   : > { %p1498_p0 = pnand %p1497_p13, %p1496_p12 }
  0x18   : > { %p1499_p3 = pneg %p1498_p0 }
  0x1a   : > { %p1504_p7 = pnand %p1502_p5, %p1499_p3 }
  0x1c   : > { %1507 = shalt.err (!%p1504_p7)
}
  0x1d   : > { %s1508_s19 = scalar_lea.vmem %s1711_s7, 1024  ;;  %p1516_p2 = scmp.lt.s32.totalorder %s1711_s7, %s1711_s7 }
  0x1e   : > { %p1509_p9 = scmp.ne.s32.totalorder %s1711_s7, %s1508_s19  ;;  %p1517_p6 = scmp.lt.s32.totalorder %s1508_s19, %s1508_s19 }
  0x20   : > { %p1511_p10 = pnand %p1509_p9, %p1497_p13  ;;  %p1518_p4 = por %p1517_p6, %p1516_p2 }
  0x22   : > { %p1512_p1 = pneg %p1511_p10 }
  0x24   : > { %p1519_p8 = pnand %p1518_p4, %p1512_p1 }
  0x26   : > { %1522 = shalt.err (!%p1519_p8)
}
  0x27   : > { %s1626_s20 = smov 64   ;;  %s1627_s26 = smov 4  }
  0x28   : > { %1437 = dma.hbm_to_vmem [thread:$0]  (!%p1718_p11), %s2066_s3, 1024, %s1711_s7, [#allocation6], %s1626_s20, %s1626_s20, %s1627_s26  }
  0x29   : > { %p28_p1 = scmp.eq.s32.totalorder %s27_s11, 0  ;;  %p37_p2 = scmp.ne.s32.totalorder %s1619_s23, %s1615_s22 }
  0x2a   : > { %p38_p4 = scmp.eq.s32.totalorder %s1623_s24, 0  ;;  %p1447_p6 = scmp.lt.s32.totalorder %s1623_s24, 2 }
  0x2b   : > { %s1757_s13 = scalar_select %p28_p1, %s1619_s23, %s30_s10  }
  0x2c   : > { %p39_p8 = por %p38_p4, %p37_p2  ;;  %p2077_p10 = scmp.eq.s32.totalorder %s1688_s25, 1 }
  0x2d   : > { %s223_s8 = sand.u32 1, %s1619_s23   ;;  %s1130_s15 = sshll.u32 %s1623_s24, 11 }
  0x2e   : > { %p1761_p12 = por %p2077_p10, %p37_p2  ;;  %s1074_s16 = sshll.u32 %s223_s8, 7 }
  0x2f   : > { %s1770_s19 = scalar_lea.hbm %s2063_s0, %s1130_s15  ;;  %s227_s7 = scalar_lea.vmem [#allocation2], %s1074_s16 }
  0x30   : > { %s234_s10 = sshll.u32 %s227_s7, 4  ;;  %p1772_p11 = pnand %p1447_p6, %p39_p8  ;;  %s1776_s10 = int_to_ptr.vmem [resolvable:$true] %s234_s10 }
  0x31   : > { %s1778_s30 = scalar_lea.sflag [#allocation3], %s223_s8  ;;  %s1523_s12 = scalar_lea.hbm %s1770_s19, 2048 }
  0x32   : > { %p1524_p13 = scmp.ne.s32.totalorder %s1770_s19, %s1523_s12  ;;  %p1525_p0 = pneg %p1772_p11 }
  0x33   : > { %s1528_s17 = scalar_lea.hbm %s2063_s0, 4096  ;;  %p1529_p7 = scmp.lt.u32.totalorder %s1770_s19, %s2063_s0 }
  0x34   : > { %p1526_p3 = pnand %p1525_p0, %p1524_p13  ;;  %p1530_p9 = scmp.lt.u32.totalorder %s1528_s17, %s1523_s12 }
  0x35   : > { %p1532_p2 = scmp.lt.u32.totalorder %s1523_s12, %s1770_s19 }
  0x36   : > { %p1527_p5 = pneg %p1526_p3  ;;  %p1531_p1 = por %p1530_p9, %p1529_p7 }
  0x38   : > { %p1533_p4 = por %p1532_p2, %p1531_p1 }
  0x3a   : > { %p1534_p6 = pnand %p1533_p4, %p1527_p5 }
  0x3c   : > { %1537 = shalt.err (!%p1534_p6)
}
  0x3d   : > { %s1538_s8 = scalar_lea.vmem %s1776_s10, 2048  ;;  %s1628_s15 = smov [#allocation2]  }
  0x3e   : > { %p1539_p8 = scmp.ne.s32.totalorder %s1776_s10, %s1538_s8  ;;  %s1543_s16 = sshll.u32 %s1628_s15, 4  ;;  %s1544_s16 = int_to_ptr.vmem [resolvable:$false] %s1543_s16 }
  0x3f   : > { %s1545_s18 = scalar_lea.vmem %s1544_s16, 4096  ;;  %p1546_p3 = scmp.lt.s32.totalorder %s1776_s10, %s1544_s16 }
  0x40   : > { %p1541_p10 = pnand %p1539_p8, %p1525_p0  ;;  %p1547_p7 = scmp.lt.s32.totalorder %s1545_s18, %s1538_s8 }
  0x42   : > { %p1542_p13 = pneg %p1541_p10  ;;  %p1548_p9 = por %p1547_p7, %p1546_p3 }
  0x44   : > { %p1549_p1 = pnand %p1548_p9, %p1542_p13 }
  0x46   : > { %1552 = shalt.err (!%p1549_p1)
}
  0x47   : > { %1441 = dma.hbm_to_vmem [thread:$0]  (!%p1772_p11), %s1770_s19, 2048, %s1776_s10, %s1778_s30, %s1626_s20, %s1626_s20, %s1627_s26  }
  0x48   : > { %p2080_p0 = scmp.ne.s32.totalorder %s2075_s29, 0 }
  0x49   : > { %s1812_s12 = sand.u32 (!%p2080_p0), 1, %s1615_s22   ;;  %p2081_p5 = scmp.ne.s32.totalorder (!%p2080_p0), %s2073_s27, 0 }
  0x4a   : > { %246 = sbr.rel (%p2080_p0) target bundleno = 381 (0x17d), region = 44  ;;  %s1078_s17 = sshll.u32 (!%p2080_p0), %s1812_s12, 7 }
  0x4b   : > { %s249_s7 = scalar_lea.sflag (!%p2080_p0), [#allocation3], %s1812_s12  ;;  %s1818_s11 = scalar_lea.vmem (!%p2080_p0), [#allocation2], %s1078_s17 }
  0x51   : > { %1598 = dma.done.wait (%p2081_p5), %s249_s7, 2048  }
  0x52   : > { %1600 = vsyncadd (%p2081_p5), %s249_s7, 4294965248  ;;  %p2082_p11 = scmp.eq.s32.totalorder %s1688_s25, 0 }
  0x54   : > { %1602 = dma.done.wait (%p2082_p11), [#allocation6], 1024   ;;  %p2083_p2 = pmov %p2082_p11 }
  0x55   : > { %v1487_v0 = vld [vmem:[#allocation5] sm:$0xff]   ;;  %v1488_v1 = vld [vmem:[#allocation5 + $0x8] sm:$0xff]   ;;  %v1489_v2 = vld [vmem:[#allocation5 + $0x10] sm:$0xff]   ;;  %s1950_s15 = scalar_lea.vmem [#allocation7], %s1078_s17  ;;  %s1163_s16 = sshll.u32 %s1688_s25, 11 }
  0x56   : > { %1604 = vsyncadd (%p2083_p2), [#allocation6], 4294966272  ;;  %1362 = vmatprep.subr.bf16.mxu0 %v1487_v0  ;;  %1410 = vmatprep.subr.bf16.mxu1 %v1487_v0  ;;  %v1490_v3 = vld [vmem:[#allocation5 + $0x18] sm:$0xff]   ;;  %v1165_v4 = vld [vmem:[%s1818_s11] sm:$0xff]   ;;  %s987_s18 = sshll.u32 %s1950_s15, 4  ;;  %s2013_s25 = scalar_lea.hbm %s2069_s6, %s1163_s16  ;;  %s2015_s18 = int_to_ptr.vmem [resolvable:$true] %s987_s18 }
  0x57   : > { %1363 = vmatpush3.bf16.msra.mxu0 %v1487_v0  ;;  %1418 = vmatpush3.bf16.msra.mxu1 %v1487_v0  ;;  %v1832_v5 = vld [vmem:[%s2064_s1] ss:$0 sm:$0xff]  ;;  %v1166_v6 = vunpack.c.l.bf16 %v1165_v4  ;;  %v1167_v7 = vunpack.c.h.bf16 %v1165_v4  ;;  %v1308_v9 = vld [vmem:[%s1818_s11 + $0x8] sm:$0xff]   ;;  %v1309_v20 = vld [vmem:[%s1818_s11 + $0x10] sm:$0xff]   ;;  %s1553_s27 = scalar_lea.vmem %s2015_s18, 2048  ;;  %s1629_s29 = smov [#allocation7]  }
  0x58   : > { %1364 = vmatprep.subr.bf16.mxu0 %v1488_v1  ;;  %1411 = vmatprep.subr.bf16.mxu1 %v1488_v1  ;;  %v1315_v8 = vld [vmem:[%s1818_s11 + $0x40] sm:$0xff]   ;;  %v1316_v10 = vld [vmem:[%s1818_s11 + $0x48] sm:$0xff]   ;;  %v1170_v14 = vunpack.c.l.bf16 %v1308_v9  ;;  %v1171_v15 = vunpack.c.h.bf16 %v1308_v9  ;;  %v1174_v32 = vunpack.c.l.bf16 %v1309_v20  ;;  %v1317_v36 = vld [vmem:[%s1818_s11 + $0x50] sm:$0xff]   ;;  %v1175_v44 = vunpack.c.h.bf16 %v1309_v20  ;;  %p1554_p4 = scmp.ne.s32.totalorder %s2015_s18, %s1553_s27  ;;  %s1557_s20 = sshll.u32 %s1629_s29, 4  ;;  %s1558_s20 = int_to_ptr.vmem [resolvable:$false] %s1557_s20 }
  0x59   : > { %v1840_v11 = vld [vmem:[%s2065_s2] ss:$0 sm:$0xff]  ;;  %v1198_v12 = vunpack.c.l.bf16 %v1315_v8  ;;  %v1199_v13 = vunpack.c.h.bf16 %v1315_v8  ;;  %v359_v16 = vmul.f32 %v1166_v6, %v1832_v5  ;;  %v360_v17 = vmul.f32 %v1167_v7, %v1832_v5  ;;  %v1492_v37 = vld [vmem:[#allocation5 + $0x28] sm:$0xff]   ;;  %v1310_v41 = vld [vmem:[%s1818_s11 + $0x18] sm:$0xff]   ;;  %s1559_s26 = scalar_lea.vmem %s1558_s20, 4096  ;;  %p1560_p10 = scmp.lt.s32.totalorder %s2015_s18, %s1558_s20 }
  0x5a   : > { %v1202_v18 = vunpack.c.l.bf16 %v1316_v10  ;;  %v1203_v19 = vunpack.c.h.bf16 %v1316_v10  ;;  %v1491_v21 = vld [vmem:[#allocation5 + $0x20] sm:$0xff]   ;;  %v361_v24 = vmul.f32 %v1170_v14, %v1832_v5  ;;  %v362_v27 = vmul.f32 %v1171_v15, %v1832_v5  ;;  %v1318_v49 = vld [vmem:[%s1818_s11 + $0x58] sm:$0xff]   ;;  %v1493_v54 = vld [vmem:[#allocation5 + $0x30] sm:$0xff]   ;;  %p1555_p6 = pnand %p1554_p4, %p1761_p12  ;;  %p1561_p13 = scmp.lt.s32.totalorder %s1559_s26, %s1553_s27 }
  0x5b   : > { %1365 = vmatpush3.bf16.msra.mxu0 %v1488_v1  ;;  %1419 = vmatpush3.bf16.msra.mxu1 %v1488_v1  ;;  %v375_v22 = vmul.f32 %v1198_v12, %v1832_v5  ;;  %v376_v23 = vmul.f32 %v1199_v13, %v1832_v5  ;;  %v398_v25 = vadd.f32 %v1840_v11, %v359_v16  ;;  %v1206_v48 = vunpack.c.l.bf16 %v1317_v36  ;;  %v1311_v63 = vld [vmem:[%s1818_s11 + $0x20] sm:$0xff]   ;;  %v1494_v9 = vld [vmem:[#allocation5 + $0x38] sm:$0xff]  }
  0x5c   : > { %1366 = vmatprep.subr.bf16.mxu0 %v1489_v2  ;;  %1412 = vmatprep.subr.bf16.mxu1 %v1489_v2  ;;  %v399_v26 = vadd.f32 %v1840_v11, %v360_v17  ;;  %v377_v28 = vmul.f32 %v1202_v18, %v1832_v5  ;;  %v400_v31 = vadd.f32 %v1840_v11, %v361_v24  ;;  %v1207_v52 = vunpack.c.h.bf16 %v1317_v36  ;;  %v1319_v15 = vld [vmem:[%s1818_s11 + $0x60] sm:$0xff]   ;;  %v1313_v36 = vld [vmem:[%s1818_s11 + $0x30] sm:$0xff]   ;;  %p1556_p8 = pneg %p1555_p6  ;;  %p1562_p3 = por %p1561_p13, %p1560_p10 }
  0x5d   : > { %v414_v29 = vadd.f32 %v1840_v11, %v375_v22  ;;  %v415_v30 = vadd.f32 %v1840_v11, %v376_v23  ;;  %v430_v33 = vmax.f32 %v398_v25, 0.0  ;;  %v378_v35 = vmul.f32 %v1203_v19, %v1832_v5  ;;  %v1312_v22 = vld [vmem:[%s1818_s11 + $0x28] sm:$0xff]  }
  0x5e   : > { %v431_v34 = vmax.f32 %v399_v26, 0.0  ;;  %v401_v40 = vadd.f32 %v1840_v11, %v362_v27  ;;  %v416_v43 = vadd.f32 %v1840_v11, %v377_v28  ;;  %v432_v46 = vmax.f32 %v400_v31, 0.0  ;;  %v1320_v27 = vld [vmem:[%s1818_s11 + $0x68] sm:$0xff]   ;;  %p1563_p7 = pnand %p1562_p3, %p1556_p8 }
  0x5f   : > { %1367 = vmatpush3.bf16.msra.mxu0 %v1489_v2  ;;  %1420 = vmatpush3.bf16.msra.mxu1 %v1489_v2  ;;  %v446_v38 = vmax.f32 %v414_v29, 0.0  ;;  %v447_v39 = vmax.f32 %v415_v30, 0.0  ;;  %v363_v47 = vmul.f32 %v1174_v32, %v1832_v5  ;;  %v417_v50 = vadd.f32 %v1840_v11, %v378_v35 }
  0x60   : > { %1368 = vmatprep.subr.bf16.mxu0 %v1490_v3  ;;  %1413 = vmatprep.subr.bf16.mxu1 %v1490_v3  ;;  %v462_v42 = vpack.c.bf16 %v431_v34, %v430_v33  ;;  %v364_v51 = vmul.f32 %v1175_v44, %v1832_v5  ;;  %v1178_v53 = vunpack.c.l.bf16 %v1310_v41  ;;  %v433_v55 = vmax.f32 %v401_v40, 0.0 }
  0x61   : > { %v470_v45 = vpack.c.bf16 %v447_v39, %v446_v38  ;;  %v402_v56 = vadd.f32 %v1840_v11, %v363_v47  ;;  %v379_v57 = vmul.f32 %v1206_v48, %v1832_v5  ;;  %v1179_v58 = vunpack.c.h.bf16 %v1310_v41 }
  0x62   : > { %1378 = vmatprep.mubr.bf16.mxu0 %v462_v42  ;;  %v403_v59 = vadd.f32 %v1840_v11, %v364_v51  ;;  %v380_v60 = vmul.f32 %v1207_v52, %v1832_v5  ;;  %v365_v61 = vmul.f32 %v1178_v53, %v1832_v5  ;;  %v1210_v62 = vunpack.c.l.bf16 %v1318_v49  ;;  %v1321_v52 = vld [vmem:[%s1818_s11 + $0x70] sm:$0xff]  }
  0x63   : > { %1369 = vmatpush3.bf16.msra.mxu0 %v1490_v3  ;;  %1421 = vmatpush3.bf16.msra.mxu1 %v1490_v3  ;;  %v448_v0 = vmax.f32 %v416_v43, 0.0  ;;  %v418_v1 = vadd.f32 %v1840_v11, %v379_v57  ;;  %v366_v2 = vmul.f32 %v1179_v58, %v1832_v5  ;;  %v1211_v3 = vunpack.c.h.bf16 %v1318_v49 }
  0x64   : > { %1370 = vmatprep.subr.bf16.mxu0 %v1491_v21  ;;  %1414 = vmatprep.subr.bf16.mxu1 %v1491_v21  ;;  %v449_v4 = vmax.f32 %v417_v50, 0.0  ;;  %v434_v6 = vmax.f32 %v402_v56, 0.0  ;;  %v435_v7 = vmax.f32 %v403_v59, 0.0  ;;  %v419_v8 = vadd.f32 %v1840_v11, %v380_v60  ;;  %v1314_v60 = vld [vmem:[%s1818_s11 + $0x38] sm:$0xff]  }
  0x65   : > { %1394 = vmatprep.mubr.bf16.mxu1 %v470_v45  ;;  %v404_v10 = vadd.f32 %v1840_v11, %v365_v61  ;;  %v381_v12 = vmul.f32 %v1210_v62, %v1832_v5  ;;  %v382_v13 = vmul.f32 %v1211_v3, %v1832_v5  ;;  %v1182_v14 = vunpack.c.l.bf16 %v1311_v63 }
  0x66   : > { %v463_v16 = vpack.c.bf16 %v433_v55, %v432_v46  ;;  %v450_v17 = vmax.f32 %v418_v1, 0.0  ;;  %v451_v18 = vmax.f32 %v419_v8, 0.0  ;;  %v405_v19 = vadd.f32 %v1840_v11, %v366_v2 }
  0x67   : > { %1371 = vmatpush3.bf16.msra.mxu0 %v1491_v21  ;;  %1422 = vmatpush3.bf16.msra.mxu1 %v1491_v21  ;;  %v1183_v20 = vunpack.c.h.bf16 %v1311_v63  ;;  %v367_v21 = vmul.f32 %v1182_v14, %v1832_v5  ;;  %v471_v23 = vpack.c.bf16 %v449_v4, %v448_v0  ;;  %v464_v24 = vpack.c.bf16 %v435_v7, %v434_v6  ;;  %v1322_v6 = vld [vmem:[%s1818_s11 + $0x78] sm:$0xff]   ;;  %s974_s11 = scalar_lea.sflag [#allocation4], %s1812_s12 }
  0x68   : > { %1372 = vmatprep.subr.bf16.mxu0 %v1492_v37  ;;  %1415 = vmatprep.subr.bf16.mxu1 %v1492_v37  ;;  %v1214_v25 = vunpack.c.l.bf16 %v1319_v15  ;;  %v1215_v26 = vunpack.c.h.bf16 %v1319_v15  ;;  %v436_v28 = vmax.f32 %v404_v10, 0.0  ;;  %v420_v29 = vadd.f32 %v1840_v11, %v381_v12 }
  0x69   : > { %v421_v30 = vadd.f32 %v1840_v11, %v382_v13  ;;  %v368_v31 = vmul.f32 %v1183_v20, %v1832_v5  ;;  %v1186_v34 = vunpack.c.l.bf16 %v1312_v22  ;;  %v1187_v35 = vunpack.c.h.bf16 %v1312_v22 }
  0x6a   : > { %v383_v32 = vmul.f32 %v1214_v25, %v1832_v5  ;;  %v384_v33 = vmul.f32 %v1215_v26, %v1832_v5  ;;  %v437_v38 = vmax.f32 %v405_v19, 0.0  ;;  %v406_v39 = vadd.f32 %v1840_v11, %v367_v21 }
  0x6b   : > { %1373 = vmatpush3.bf16.msra.mxu0 %v1492_v37  ;;  %1423 = vmatpush3.bf16.msra.mxu1 %v1492_v37  ;;  %v472_v37 = vpack.c.bf16 %v451_v18, %v450_v17  ;;  %v1218_v40 = vunpack.c.l.bf16 %v1320_v27  ;;  %v407_v41 = vadd.f32 %v1840_v11, %v368_v31  ;;  %v1219_v44 = vunpack.c.h.bf16 %v1320_v27 }
  0x6c   : > { %1374 = vmatprep.subr.bf16.mxu0 %v1493_v54  ;;  %1416 = vmatprep.subr.bf16.mxu1 %v1493_v54  ;;  %v422_v42 = vadd.f32 %v1840_v11, %v383_v32  ;;  %v423_v43 = vadd.f32 %v1840_v11, %v384_v33  ;;  %v369_v45 = vmul.f32 %v1186_v34, %v1832_v5  ;;  %v1190_v47 = vunpack.c.l.bf16 %v1313_v36 }
  0x6d   : > { %v370_v46 = vmul.f32 %v1187_v35, %v1832_v5  ;;  %v452_v48 = vmax.f32 %v420_v29, 0.0  ;;  %v453_v49 = vmax.f32 %v421_v30, 0.0  ;;  %v385_v50 = vmul.f32 %v1218_v40, %v1832_v5 }
  0x6e   : > { %v386_v51 = vmul.f32 %v1219_v44, %v1832_v5  ;;  %v465_v53 = vpack.c.bf16 %v437_v38, %v436_v28  ;;  %v1191_v55 = vunpack.c.h.bf16 %v1313_v36  ;;  %v439_v56 = vmax.f32 %v407_v41, 0.0 }
  0x6f   : > { %1375 = vmatpush3.bf16.msra.mxu0 %v1493_v54  ;;  %1424 = vmatpush3.bf16.msra.mxu1 %v1493_v54  ;;  %v438_v54 = vmax.f32 %v406_v39, 0.0  ;;  %v454_v57 = vmax.f32 %v422_v42, 0.0  ;;  %v455_v58 = vmax.f32 %v423_v43, 0.0  ;;  %v371_v59 = vmul.f32 %v1190_v47, %v1832_v5 }
  0x70   : > { %1376 = vmatprep.subr.bf16.mxu0 %v1494_v9  ;;  %1417 = vmatprep.subr.bf16.mxu1 %v1494_v9  ;;  %v408_v61 = vadd.f32 %v1840_v11, %v369_v45  ;;  %v409_v62 = vadd.f32 %v1840_v11, %v370_v46  ;;  %v372_v63 = vmul.f32 %v1191_v55, %v1832_v5  ;;  %v1222_v0 = vunpack.c.l.bf16 %v1321_v52  ;;  %v1921_v45 = vld [vmem:[%s2067_s4] ss:$0 sm:$0xff] }
  0x71   : > { %v473_v1 = vpack.c.bf16 %v453_v49, %v452_v48  ;;  %v424_v2 = vadd.f32 %v1840_v11, %v385_v50  ;;  %v425_v3 = vadd.f32 %v1840_v11, %v386_v51  ;;  %v1223_v4 = vunpack.c.h.bf16 %v1321_v52  ;;  %v1926_v46 = vld [vmem:[%s2068_s5] ss:$0 sm:$0xff] }
  0x72   : > { %v410_v7 = vadd.f32 %v1840_v11, %v371_v59  ;;  %v387_v8 = vmul.f32 %v1222_v0, %v1832_v5  ;;  %v1195_v10 = vunpack.c.h.bf16 %v1314_v60  ;;  %v466_v12 = vpack.c.bf16 %v439_v56, %v438_v54 }
  0x73   : > { %1377 = vmatpush3.bf16.msra.mxu0 %v1494_v9  ;;  %1425 = vmatpush3.bf16.msra.mxu1 %v1494_v9  ;;  %v1194_v9 = vunpack.c.l.bf16 %v1314_v60  ;;  %v474_v13 = vpack.c.bf16 %v455_v58, %v454_v57  ;;  %v411_v14 = vadd.f32 %v1840_v11, %v372_v63  ;;  %v388_v15 = vmul.f32 %v1223_v4, %v1832_v5 }
  0x74   : > { %v441_v17 = vmax.f32 %v409_v62, 0.0  ;;  %v426_v18 = vadd.f32 %v1840_v11, %v387_v8  ;;  %v1226_v19 = vunpack.c.l.bf16 %v1322_v6  ;;  %v456_v20 = vmax.f32 %v424_v2, 0.0 }
  0x75   : > { %v457_v21 = vmax.f32 %v425_v3, 0.0  ;;  %v427_v22 = vadd.f32 %v1840_v11, %v388_v15  ;;  %v373_v25 = vmul.f32 %v1194_v9, %v1832_v5  ;;  %v374_v26 = vmul.f32 %v1195_v10, %v1832_v5 }
  0x76   : > { %1379 = vmatmul.mubr.bf16.vlgmr.msra.gmra.mrb[0].mxu0 %v463_v16  ;;  %1395 = vmatmul.mubr.bf16.vlgmr.msra.gmra.mrb[0].mxu1 %v471_v23  ;;  %v440_v16 = vmax.f32 %v408_v61, 0.0  ;;  %v1227_v23 = vunpack.c.h.bf16 %v1322_v6  ;;  %v389_v27 = vmul.f32 %v1226_v19, %v1832_v5  ;;  %v443_v28 = vmax.f32 %v411_v14, 0.0 }
  0x77   : > { %1382 = vmatprep.mubr.bf16.mxu0 %v464_v24  ;;  %1398 = vmatprep.mubr.bf16.mxu1 %v472_v37  ;;  %v442_v24 = vmax.f32 %v410_v7, 0.0  ;;  %v458_v29 = vmax.f32 %v426_v18, 0.0  ;;  %v459_v30 = vmax.f32 %v427_v22, 0.0  ;;  %v475_v33 = vpack.c.bf16 %v457_v21, %v456_v20 }
  0x78   : > { %v390_v31 = vmul.f32 %v1227_v23, %v1832_v5  ;;  %v467_v32 = vpack.c.bf16 %v441_v17, %v440_v16  ;;  %v412_v34 = vadd.f32 %v1840_v11, %v373_v25  ;;  %v413_v35 = vadd.f32 %v1840_v11, %v374_v26 }
  0x79   : > { %v428_v36 = vadd.f32 %v1840_v11, %v389_v27  ;;  %v468_v38 = vpack.c.bf16 %v443_v28, %v442_v24  ;;  %v476_v39 = vpack.c.bf16 %v459_v30, %v458_v29 }
  0x7a   : > { %v429_v37 = vadd.f32 %v1840_v11, %v390_v31  ;;  %v444_v40 = vmax.f32 %v412_v34, 0.0  ;;  %v445_v41 = vmax.f32 %v413_v35, 0.0 }
  0x7b   : > { %v460_v42 = vmax.f32 %v428_v36, 0.0 }
  0x7c   : > { %v461_v43 = vmax.f32 %v429_v37, 0.0  ;;  %v469_v5 = vpack.c.bf16 %v445_v41, %v444_v40 }
  0x7e   : > { %1383 = vmatmul.mubr.bf16.gmra.mrb[4].mxu0 %v465_v53  ;;  %1399 = vmatmul.mubr.bf16.gmra.mrb[4].mxu1 %v473_v1  ;;  %v477_v44 = vpack.c.bf16 %v461_v43, %v460_v42 }
  0x7f   : > { %1386 = vmatprep.mubr.bf16.mxu0 %v466_v12  ;;  %1402 = vmatprep.mubr.bf16.mxu1 %v474_v13 }
  0x86   : > { %1387 = vmatmul.mubr.bf16.gmra.mrb[8].mxu0 %v467_v32  ;;  %1403 = vmatmul.mubr.bf16.gmra.mrb[8].mxu1 %v475_v33 }
  0x87   : > { %1390 = vmatprep.mubr.bf16.mxu0 %v468_v38  ;;  %1406 = vmatprep.mubr.bf16.mxu1 %v476_v39 }
  0x8e   : > { %1391 = vmatmul.mubr.bf16.gmra.mrb[12].mxu0 %v469_v5  ;;  %1407 = vmatmul.mubr.bf16.gmra.mrb[12].mxu1 %v477_v44 }
 0x149   : > { %v1380_v11 = vpop.f32.mrb[0].mxu0  ;;  %v1396_v47 = vpop.f32.mrb[0].mxu1 }
 0x14a   : > { %v712_v48 = vmul.f32 %v1380_v11, %v1921_v45  ;;  %v728_v49 = vmul.f32 %v1396_v47, %v1921_v45  ;;  %v576_v50 = vpop.f32.mrb[1].mxu0  ;;  %v640_v51 = vpop.f32.mrb[1].mxu1 }
 0x14b   : > { %v710_v52 = vmul.f32 %v1921_v45, %v576_v50  ;;  %v726_v53 = vmul.f32 %v1921_v45, %v640_v51  ;;  %v1381_v54 = vpop.f32.mrb[2].mxu0  ;;  %v1397_v55 = vpop.f32.mrb[2].mxu1 }
 0x14c   : > { %v751_v56 = vadd.f32 %v1926_v46, %v712_v48  ;;  %v767_v57 = vadd.f32 %v1926_v46, %v728_v49  ;;  %v713_v58 = vmul.f32 %v1381_v54, %v1921_v45  ;;  %v729_v59 = vmul.f32 %v1397_v55, %v1921_v45  ;;  %v579_v60 = vpop.f32.mrb[3].mxu0  ;;  %v643_v61 = vpop.f32.mrb[3].mxu1 }
 0x14d   : > { %v749_v62 = vadd.f32 %v1926_v46, %v710_v52  ;;  %v765_v63 = vadd.f32 %v1926_v46, %v726_v53  ;;  %v711_v0 = vmul.f32 %v1921_v45, %v579_v60  ;;  %v727_v1 = vmul.f32 %v1921_v45, %v643_v61 }
 0x14e   : > { %v752_v2 = vadd.f32 %v1926_v46, %v713_v58  ;;  %v768_v3 = vadd.f32 %v1926_v46, %v729_v59  ;;  %v783_v7 = vmax.f32 %v751_v56, 0.0  ;;  %v799_v8 = vmax.f32 %v767_v57, 0.0 }
 0x14f   : > { %v750_v4 = vadd.f32 %v1926_v46, %v711_v0  ;;  %v766_v6 = vadd.f32 %v1926_v46, %v727_v1  ;;  %v781_v12 = vmax.f32 %v749_v62, 0.0  ;;  %v797_v13 = vmax.f32 %v765_v63, 0.0 }
 0x150   : > { %v784_v9 = vmax.f32 %v752_v2, 0.0  ;;  %v800_v10 = vmax.f32 %v768_v3, 0.0 }
 0x151   : > { %v782_v14 = vmax.f32 %v750_v4, 0.0  ;;  %v798_v15 = vmax.f32 %v766_v6, 0.0  ;;  %v1384_v16 = vpop.f32.mrb[4].mxu0  ;;  %v1400_v17 = vpop.f32.mrb[4].mxu1 }
 0x152   : > { %v1236_v18 = vpack.c.bf16 %v784_v9, %v783_v7  ;;  %v1276_v19 = vpack.c.bf16 %v800_v10, %v799_v8  ;;  %v716_v20 = vmul.f32 %v1384_v16, %v1921_v45  ;;  %v732_v21 = vmul.f32 %v1400_v17, %v1921_v45  ;;  %v592_v22 = vpop.f32.mrb[5].mxu0  ;;  %v656_v23 = vpop.f32.mrb[5].mxu1 }
 0x153   : > { %v1231_v24 = vpack.c.bf16 %v782_v14, %v781_v12  ;;  %v1271_v25 = vpack.c.bf16 %v798_v15, %v797_v13  ;;  %v714_v26 = vmul.f32 %v1921_v45, %v592_v22  ;;  %v730_v27 = vmul.f32 %v1921_v45, %v656_v23  ;;  %v1385_v28 = vpop.f32.mrb[6].mxu0  ;;  %v1401_v29 = vpop.f32.mrb[6].mxu1 }
 0x154   : > { %1323 = vst [vmem:[%s1950_s15 + $0x8] sm:$0xff] %v1236_v18   ;;  %1331 = vst [vmem:[%s1950_s15 + $0x48] sm:$0xff] %v1276_v19   ;;  %v755_v30 = vadd.f32 %v1926_v46, %v716_v20  ;;  %v771_v31 = vadd.f32 %v1926_v46, %v732_v21  ;;  %v717_v32 = vmul.f32 %v1385_v28, %v1921_v45  ;;  %v595_v34 = vpop.f32.mrb[7].mxu0  ;;  %v659_v35 = vpop.f32.mrb[7].mxu1 }
 0x155   : > { %v733_v33 = vmul.f32 %v1401_v29, %v1921_v45  ;;  %1232 = vst [vmem:[%s1950_s15] sm:$0xff] %v1231_v24   ;;  %1330 = vst [vmem:[%s1950_s15 + $0x40] sm:$0xff] %v1271_v25   ;;  %v753_v36 = vadd.f32 %v1926_v46, %v714_v26  ;;  %v769_v37 = vadd.f32 %v1926_v46, %v730_v27 }
 0x156   : > { %v715_v38 = vmul.f32 %v1921_v45, %v595_v34  ;;  %v731_v39 = vmul.f32 %v1921_v45, %v659_v35  ;;  %v756_v40 = vadd.f32 %v1926_v46, %v717_v32  ;;  %v787_v5 = vmax.f32 %v755_v30, 0.0 }
 0x157   : > { %v772_v41 = vadd.f32 %v1926_v46, %v733_v33  ;;  %v803_v44 = vmax.f32 %v771_v31, 0.0  ;;  %v785_v48 = vmax.f32 %v753_v36, 0.0  ;;  %v801_v49 = vmax.f32 %v769_v37, 0.0 }
 0x158   : > { %v754_v42 = vadd.f32 %v1926_v46, %v715_v38  ;;  %v770_v43 = vadd.f32 %v1926_v46, %v731_v39  ;;  %v788_v11 = vmax.f32 %v756_v40, 0.0 }
 0x159   : > { %v804_v47 = vmax.f32 %v772_v41, 0.0  ;;  %v1388_v52 = vpop.f32.mrb[8].mxu0  ;;  %v1404_v53 = vpop.f32.mrb[8].mxu1 }
 0x15a   : > { %v786_v50 = vmax.f32 %v754_v42, 0.0  ;;  %v802_v51 = vmax.f32 %v770_v43, 0.0  ;;  %v1246_v54 = vpack.c.bf16 %v788_v11, %v787_v5  ;;  %v720_v56 = vmul.f32 %v1388_v52, %v1921_v45  ;;  %v608_v58 = vpop.f32.mrb[9].mxu0  ;;  %v672_v59 = vpop.f32.mrb[9].mxu1 }
 0x15b   : > { %v1286_v55 = vpack.c.bf16 %v804_v47, %v803_v44  ;;  %v736_v57 = vmul.f32 %v1404_v53, %v1921_v45  ;;  %v718_v62 = vmul.f32 %v1921_v45, %v608_v58  ;;  %v734_v63 = vmul.f32 %v1921_v45, %v672_v59  ;;  %v1389_v0 = vpop.f32.mrb[10].mxu0  ;;  %v1405_v1 = vpop.f32.mrb[10].mxu1 }
 0x15c   : > { %v1241_v60 = vpack.c.bf16 %v786_v50, %v785_v48  ;;  %v1281_v61 = vpack.c.bf16 %v802_v51, %v801_v49  ;;  %1325 = vst [vmem:[%s1950_s15 + $0x18] sm:$0xff] %v1246_v54   ;;  %v759_v2 = vadd.f32 %v1926_v46, %v720_v56  ;;  %v721_v4 = vmul.f32 %v1389_v0, %v1921_v45  ;;  %v611_v7 = vpop.f32.mrb[11].mxu0  ;;  %v675_v8 = vpop.f32.mrb[11].mxu1 }
 0x15d   : > { %1333 = vst [vmem:[%s1950_s15 + $0x58] sm:$0xff] %v1286_v55   ;;  %v775_v3 = vadd.f32 %v1926_v46, %v736_v57  ;;  %v737_v6 = vmul.f32 %v1405_v1, %v1921_v45  ;;  %v757_v9 = vadd.f32 %v1926_v46, %v718_v62  ;;  %v773_v10 = vadd.f32 %v1926_v46, %v734_v63 }
 0x15e   : > { %1324 = vst [vmem:[%s1950_s15 + $0x10] sm:$0xff] %v1241_v60   ;;  %1332 = vst [vmem:[%s1950_s15 + $0x50] sm:$0xff] %v1281_v61   ;;  %v719_v12 = vmul.f32 %v1921_v45, %v611_v7  ;;  %v735_v13 = vmul.f32 %v1921_v45, %v675_v8  ;;  %v760_v14 = vadd.f32 %v1926_v46, %v721_v4  ;;  %v791_v18 = vmax.f32 %v759_v2, 0.0 }
 0x15f   : > { %v776_v15 = vadd.f32 %v1926_v46, %v737_v6  ;;  %v807_v19 = vmax.f32 %v775_v3, 0.0  ;;  %v789_v22 = vmax.f32 %v757_v9, 0.0  ;;  %v805_v23 = vmax.f32 %v773_v10, 0.0 }
 0x160   : > { %v758_v16 = vadd.f32 %v1926_v46, %v719_v12  ;;  %v774_v17 = vadd.f32 %v1926_v46, %v735_v13  ;;  %v792_v20 = vmax.f32 %v760_v14, 0.0 }
 0x161   : > { %v808_v21 = vmax.f32 %v776_v15, 0.0  ;;  %v1392_v26 = vpop.f32.mrb[12].mxu0  ;;  %v1408_v27 = vpop.f32.mrb[12].mxu1 }
 0x162   : > { %v790_v24 = vmax.f32 %v758_v16, 0.0  ;;  %v806_v25 = vmax.f32 %v774_v17, 0.0  ;;  %v1256_v28 = vpack.c.bf16 %v792_v20, %v791_v18  ;;  %v724_v30 = vmul.f32 %v1392_v26, %v1921_v45  ;;  %v624_v32 = vpop.f32.mrb[13].mxu0  ;;  %v688_v33 = vpop.f32.mrb[13].mxu1 }
 0x163   : > { %v1296_v29 = vpack.c.bf16 %v808_v21, %v807_v19  ;;  %v740_v31 = vmul.f32 %v1408_v27, %v1921_v45  ;;  %v722_v36 = vmul.f32 %v1921_v45, %v624_v32  ;;  %v738_v37 = vmul.f32 %v1921_v45, %v688_v33  ;;  %v1393_v38 = vpop.f32.mrb[14].mxu0  ;;  %v1409_v39 = vpop.f32.mrb[14].mxu1 }
 0x164   : > { %v1251_v34 = vpack.c.bf16 %v790_v24, %v789_v22  ;;  %v1291_v35 = vpack.c.bf16 %v806_v25, %v805_v23  ;;  %1327 = vst [vmem:[%s1950_s15 + $0x28] sm:$0xff] %v1256_v28   ;;  %v763_v40 = vadd.f32 %v1926_v46, %v724_v30  ;;  %v725_v42 = vmul.f32 %v1393_v38, %v1921_v45  ;;  %v627_v5 = vpop.f32.mrb[15].mxu0  ;;  %v691_v44 = vpop.f32.mrb[15].mxu1 }
 0x165   : > { %1335 = vst [vmem:[%s1950_s15 + $0x68] sm:$0xff] %v1296_v29   ;;  %v779_v41 = vadd.f32 %v1926_v46, %v740_v31  ;;  %v741_v43 = vmul.f32 %v1409_v39, %v1921_v45  ;;  %v761_v11 = vadd.f32 %v1926_v46, %v722_v36  ;;  %v777_v47 = vadd.f32 %v1926_v46, %v738_v37 }
 0x166   : > { %1326 = vst [vmem:[%s1950_s15 + $0x20] sm:$0xff] %v1251_v34   ;;  %1334 = vst [vmem:[%s1950_s15 + $0x60] sm:$0xff] %v1291_v35   ;;  %v723_v48 = vmul.f32 %v1921_v45, %v627_v5  ;;  %v739_v49 = vmul.f32 %v1921_v45, %v691_v44  ;;  %v764_v50 = vadd.f32 %v1926_v46, %v725_v42  ;;  %v795_v54 = vmax.f32 %v763_v40, 0.0 }
 0x167   : > { %v780_v51 = vadd.f32 %v1926_v46, %v741_v43  ;;  %v811_v55 = vmax.f32 %v779_v41, 0.0  ;;  %v793_v45 = vmax.f32 %v761_v11, 0.0  ;;  %v809_v58 = vmax.f32 %v777_v47, 0.0 }
 0x168   : > { %v762_v52 = vadd.f32 %v1926_v46, %v723_v48  ;;  %v778_v53 = vadd.f32 %v1926_v46, %v739_v49  ;;  %v796_v56 = vmax.f32 %v764_v50, 0.0 }
 0x169   : > { %v812_v57 = vmax.f32 %v780_v51, 0.0 }
 0x16a   : > { %v794_v59 = vmax.f32 %v762_v52, 0.0  ;;  %v810_v60 = vmax.f32 %v778_v53, 0.0  ;;  %v1266_v61 = vpack.c.bf16 %v796_v56, %v795_v54 }
 0x16b   : > { %v1306_v62 = vpack.c.bf16 %v812_v57, %v811_v55 }
 0x16c   : > { %v1261_v46 = vpack.c.bf16 %v794_v59, %v793_v45  ;;  %v1301_v63 = vpack.c.bf16 %v810_v60, %v809_v58  ;;  %1329 = vst [vmem:[%s1950_s15 + $0x38] sm:$0xff] %v1266_v61  }
 0x16d   : > { %1337 = vst [vmem:[%s1950_s15 + $0x78] sm:$0xff] %v1306_v62  }
 0x16e   : > { %1328 = vst [vmem:[%s1950_s15 + $0x30] sm:$0xff] %v1261_v46   ;;  %1336 = vst [vmem:[%s1950_s15 + $0x70] sm:$0xff] %v1301_v63  }
 0x16f   : > { %1566 = shalt.err (!%p1563_p7)
}
 0x170   : > { %s1567_s19 = scalar_lea.hbm %s2013_s25, 2048  ;;  %s1571_s8 = scalar_lea.hbm %s2069_s6, 4096 }
 0x171   : > { %p1568_p9 = scmp.ne.s32.totalorder %s2013_s25, %s1567_s19  ;;  %p1572_p5 = scmp.lt.u32.totalorder %s2013_s25, %s2069_s6 }
 0x172   : > { %p1573_p11 = scmp.lt.u32.totalorder %s1571_s8, %s1567_s19  ;;  %p1575_p4 = scmp.lt.u32.totalorder %s1567_s19, %s2013_s25 }
 0x173   : > { %p1569_p1 = pnand %p1568_p9, %p1761_p12 }
 0x174   : > { %p1574_p2 = por %p1573_p11, %p1572_p5 }
 0x175   : > { %p1570_p0 = pneg %p1569_p1 }
 0x176   : > { %p1576_p6 = por %p1575_p4, %p1574_p2 }
 0x178   : > { %p1577_p8 = pnand %p1576_p6, %p1570_p0 }
 0x17a   : > { %1580 = shalt.err (!%p1577_p8)
}
 0x17b   : > { %s1630_s17 = smov 64   ;;  %s1631_s7 = smov 4  }
 0x17c   : > { %1432 = dma.vmem_to_hbm [thread:$0]  (%p1761_p12), %s2015_s18, 2048, %s2013_s25, %s974_s11, %s1630_s17, %s1630_s17, %s1631_s7  }
 0x17d PF: > { %s1002_s27 = sand.u32 1, %s1611_s21   ;;  %p2084_p10 = scmp.ne.s32.totalorder %s2074_s28, 0 }
 0x17e   : > { %p2085_p13 = scmp.ge.s32.totalorder %s1623_s24, 2  ;;  %s1003_s29 = scalar_lea.sflag [#allocation4], %s1002_s27 }
 0x180   : > { %p1443_p3 = pnand %p2085_p13, %p2084_p10 }
 0x182   : > { %1606 = dma.done.wait (!%p1443_p3), %s1003_s29, 2048  }
 0x183   : > { %1608 = vsyncadd (!%p1443_p3), %s1003_s29, 4294965248  ;;  %p20_p7 = scmp.ge.s32.totalorder %s1723_s9, 4   ;;  %s2086_s21 = smov %s1615_s22 }
 0x184   : > { %s2087_s22 = smov %s1619_s23  ;;  %s2088_s23 = smov %s1757_s13 }
 0x185   : > { %s2089_s24 = smov %s1723_s9  ;;  %22 = sbr.rel (!%p20_p7) target bundleno = 6 (0x6), region = 93 }
 0x18c   :  { %1008 = vsyncpa [#allocation3], 1 }
 0x18d   :  { %1010 = vsyncpa [#allocation3 + $0x1], 1 }
 0x18e   :  { %1011 = vsyncpa [#allocation6], 1 }
 0x18f   :  { %1012 = vsyncpa [#allocation4], 1 }
 0x190   :  { %1014 = vsyncpa [#allocation4 + $0x1], 1 }

</bundles_post_ra>
